<compile_context>
chip_gen: v7x
topology: tpu7x:2x2x1
jax: 0.10.0
libtpu: 0.0.40
codegen_flags: <defaults>
</compile_context>

<pallas_src>
import functools

import jax
import jax.numpy as jnp
from jax.experimental import pallas as pl
from jax.experimental.pallas import tpu as pltpu

BN_EPS = 1e-5
LANE = 128
SUBLANE = 8


# ----------------------------------------------------------------------------
# Small helpers
# ----------------------------------------------------------------------------
def _round_up(x, m):
    return (x + m - 1) // m * m


def _pad2(a, rows, cols):
    return jnp.pad(a, ((0, rows - a.shape[0]), (0, cols - a.shape[1])))


def _pad1(v, cols):
    return jnp.pad(v, (0, cols - v.shape[0]))


def _choose_tile_n(n_rows, k_pad, f_pad):
    """Batch tile: <=512 rows, multiple of 8, sized so the double-buffered
    activation blocks stay well under VMEM even on v7x (64 MiB)."""
    n8 = _round_up(max(n_rows, 1), SUBLANE)
    budget = 4 * 1024 * 1024  # bytes for x-block + out-blocks, x2 buffers
    per_row = 4 * (k_pad + 2 * f_pad) * 2
    rows = max(SUBLANE, (budget // per_row) // SUBLANE * SUBLANE)
    return int(min(512, n8, rows))


def _cost(n, k, f):
    return pl.CostEstimate(
        flops=2 * n * k * f,
        transcendentals=0,
        bytes_accessed=4 * (n * k + k * f + n * f),
    )


# ----------------------------------------------------------------------------
# Kernels
# ----------------------------------------------------------------------------
def _partial_stats(z, stats_ref, tile_n, n_true, needs_mask):
    """Per-tile partial (sum, sum-of-squares) over the batch axis (real rows)."""
    zm = z
    if needs_mask:
        row = jax.lax.broadcasted_iota(jnp.int32, (tile_n, 1), 0)
        valid = (row + pl.program_id(0) * tile_n) < n_true
        zm = jnp.where(valid, z, 0.0)
    s = jnp.sum(zm, axis=0, keepdims=True)        # (1, F)
    sq = jnp.sum(zm * zm, axis=0, keepdims=True)  # (1, F)
    stats_ref[0:1, 0:1, :] = s[None]
    stats_ref[0:1, 1:2, :] = sq[None]


def _linear_stats_kernel(x_ref, w_ref, b_ref, z_ref, stats_ref, *,
                         tile_n, n_true, needs_mask):
    """z = x @ W + b ; partial batch stats of z."""
    z = jnp.dot(x_ref[...], w_ref[...], preferred_element_type=jnp.float32)
    z = z + b_ref[...]
    z_ref[...] = z
    _partial_stats(z, stats_ref, tile_n, n_true, needs_mask)


def _bn_relu_linear_stats_kernel(z_ref, scale_ref, shift_ref, w_ref, b_ref,
                                 z2_ref, stats_ref, *, tile_n, n_true, needs_mask):
    """h = relu(z*scale + shift) ; z2 = h @ W + b ; partial batch stats of z2."""
    h = jnp.maximum(z_ref[...] * scale_ref[...] + shift_ref[...], 0.0)
    z2 = jnp.dot(h, w_ref[...], preferred_element_type=jnp.float32) + b_ref[...]
    z2_ref[...] = z2
    _partial_stats(z2, stats_ref, tile_n, n_true, needs_mask)


def _bn_relu_linear_kernel(z_ref, scale_ref, shift_ref, w_ref, b_ref, o_ref):
    """h = relu(z*scale + shift) ; o = h @ W + b   (final layer, no stats)."""
    h = jnp.maximum(z_ref[...] * scale_ref[...] + shift_ref[...], 0.0)
    z = jnp.dot(h, w_ref[...], preferred_element_type=jnp.float32) + b_ref[...]
    o_ref[...] = z.astype(o_ref.dtype)


def _linear_kernel(x_ref, w_ref, b_ref, o_ref):
    """o = x @ W + b   (num_layers == 1 path)."""
    z = jnp.dot(x_ref[...], w_ref[...], preferred_element_type=jnp.float32) + b_ref[...]
    o_ref[...] = z.astype(o_ref.dtype)


# ----------------------------------------------------------------------------
# pallas_call wrappers (all batch-tiled, batch axis marked "parallel")
# ----------------------------------------------------------------------------
_PARALLEL = pltpu.CompilerParams(dimension_semantics=("parallel",))


def _linear_with_stats(x_p, w_p, b_p, tile_n, n_true):
    n_pad, k_pad = x_p.shape
    f_pad = w_p.shape[1]
    num_tiles = n_pad // tile_n
    kern = functools.partial(_linear_stats_kernel, tile_n=tile_n,
                             n_true=n_true, needs_mask=(n_pad != n_true))
    return pl.pallas_call(
        kern,
        grid=(num_tiles,),
        in_specs=[
            pl.BlockSpec((tile_n, k_pad), lambda i: (i, 0)),
            pl.BlockSpec((k_pad, f_pad), lambda i: (0, 0)),
            pl.BlockSpec((1, f_pad), lambda i: (0, 0)),
        ],
        out_specs=(
            pl.BlockSpec((tile_n, f_pad), lambda i: (i, 0)),
            pl.BlockSpec((1, 2, f_pad), lambda i: (i, 0, 0)),
        ),
        out_shape=(
            jax.ShapeDtypeStruct((n_pad, f_pad), jnp.float32),
            jax.ShapeDtypeStruct((num_tiles, 2, f_pad), jnp.float32),
        ),
        compiler_params=_PARALLEL,
        cost_estimate=_cost(n_pad, k_pad, f_pad),
    )(x_p, w_p, b_p)


def _bn_relu_linear_with_stats(z, scale, shift, w_p, b_p, tile_n, n_true):
    n_pad, k_pad = z.shape
    f_pad = w_p.shape[1]
    num_tiles = n_pad // tile_n
    kern = functools.partial(_bn_relu_linear_stats_kernel, tile_n=tile_n,
                             n_true=n_true, needs_mask=(n_pad != n_true))
    return pl.pallas_call(
        kern,
        grid=(num_tiles,),
        in_specs=[
            pl.BlockSpec((tile_n, k_pad), lambda i: (i, 0)),
            pl.BlockSpec((1, k_pad), lambda i: (0, 0)),
            pl.BlockSpec((1, k_pad), lambda i: (0, 0)),
            pl.BlockSpec((k_pad, f_pad), lambda i: (0, 0)),
            pl.BlockSpec((1, f_pad), lambda i: (0, 0)),
        ],
        out_specs=(
            pl.BlockSpec((tile_n, f_pad), lambda i: (i, 0)),
            pl.BlockSpec((1, 2, f_pad), lambda i: (i, 0, 0)),
        ),
        out_shape=(
            jax.ShapeDtypeStruct((n_pad, f_pad), jnp.float32),
            jax.ShapeDtypeStruct((num_tiles, 2, f_pad), jnp.float32),
        ),
        compiler_params=_PARALLEL,
        cost_estimate=_cost(n_pad, k_pad, f_pad),
    )(z, scale, shift, w_p, b_p)


def _bn_relu_linear(z, scale, shift, w_p, b_p, tile_n):
    n_pad, k_pad = z.shape
    f_pad = w_p.shape[1]
    num_tiles = n_pad // tile_n
    return pl.pallas_call(
        _bn_relu_linear_kernel,
        grid=(num_tiles,),
        in_specs=[
            pl.BlockSpec((tile_n, k_pad), lambda i: (i, 0)),
            pl.BlockSpec((1, k_pad), lambda i: (0, 0)),
            pl.BlockSpec((1, k_pad), lambda i: (0, 0)),
            pl.BlockSpec((k_pad, f_pad), lambda i: (0, 0)),
            pl.BlockSpec((1, f_pad), lambda i: (0, 0)),
        ],
        out_specs=pl.BlockSpec((tile_n, f_pad), lambda i: (i, 0)),
        out_shape=jax.ShapeDtypeStruct((n_pad, f_pad), jnp.float32),
        compiler_params=_PARALLEL,
        cost_estimate=_cost(n_pad, k_pad, f_pad),
    )(z, scale, shift, w_p, b_p)


def _linear(x_p, w_p, b_p, tile_n):
    n_pad, k_pad = x_p.shape
    f_pad = w_p.shape[1]
    num_tiles = n_pad // tile_n
    return pl.pallas_call(
        _linear_kernel,
        grid=(num_tiles,),
        in_specs=[
            pl.BlockSpec((tile_n, k_pad), lambda i: (i, 0)),
            pl.BlockSpec((k_pad, f_pad), lambda i: (0, 0)),
            pl.BlockSpec((1, f_pad), lambda i: (0, 0)),
        ],
        out_specs=pl.BlockSpec((tile_n, f_pad), lambda i: (i, 0)),
        out_shape=jax.ShapeDtypeStruct((n_pad, f_pad), jnp.float32),
        compiler_params=_PARALLEL,
        cost_estimate=_cost(n_pad, k_pad, f_pad),
    )(x_p, w_p, b_p)


def _bn_scale_shift(stats_partial, gamma_p, beta_p, n_true):
    """Tiny O(F) finalize: fold BN batch stats into an affine (scale, shift)."""
    tot = jnp.sum(stats_partial, axis=0)                     # (2, F_pad)
    mean = tot[0] / n_true
    var = jnp.maximum(tot[1] / n_true - mean * mean, 0.0)    # biased variance
    scale = gamma_p * jax.lax.rsqrt(var + BN_EPS)
    shift = beta_p - mean * scale
    return scale[None, :], shift[None, :]


# ----------------------------------------------------------------------------
# MLP forward (orchestration; all heavy math inside the Pallas kernels above)
# ----------------------------------------------------------------------------
@jax.jit
def mlp_forward(params, x):
    linears = params["linears"]
    bns = params["bn"]
    num_layers = len(linears)
    n = x.shape[0]
    out_size = linears[-1][0].shape[1]

    k_pads = [_round_up(w.shape[0], LANE) for (w, _) in linears]
    f_pads = [_round_up(w.shape[1], LANE) for (w, _) in linears]
    tile_n = _choose_tile_n(n, max(k_pads), max(f_pads))
    n_pad = _round_up(n, tile_n)

    # Zero-pad parameters once (padded features stay identically zero).
    w_p = [_pad2(w.astype(jnp.float32), k_pads[i], f_pads[i])
           for i, (w, _) in enumerate(linears)]
    b_p = [_pad1(b.astype(jnp.float32), f_pads[i])[None, :]
           for i, (_, b) in enumerate(linears)]
    g_p = [_pad1(g.astype(jnp.float32), f_pads[i]) for i, (g, _) in enumerate(bns)]
    be_p = [_pad1(bt.astype(jnp.float32), f_pads[i]) for i, (_, bt) in enumerate(bns)]

    x_p = _pad2(x.astype(jnp.float32), n_pad, k_pads[0])

    if num_layers == 1:
        out_p = _linear(x_p, w_p[0], b_p[0], tile_n)
        return out_p[:n, :out_size]

    # Layer 0: matmul + partial batch statistics.
    z, stats = _linear_with_stats(x_p, w_p[0], b_p[0], tile_n, n)
    scale, shift = _bn_scale_shift(stats, g_p[0], be_p[0], n)

    # Middle hidden layers: BN+ReLU of previous z fused into the next matmul.
    for layer in range(1, num_layers - 1):
        z, stats = _bn_relu_linear_with_stats(z, scale, shift,
                                              w_p[layer], b_p[layer], tile_n, n)
        scale, shift = _bn_scale_shift(stats, g_p[layer], be_p[layer], n)

    # Final layer: BN+ReLU fused into the output matmul.
    out_p = _bn_relu_linear(z, scale, shift, w_p[-1], b_p[-1], tile_n)
    return out_p[:n, :out_size]


# ----------------------------------------------------------------------------
# Parameter init (mimics nn.Linear / nn.BatchNorm1d defaults)
# ----------------------------------------------------------------------------
def init_mlp_params(key, num_layers, in_size, hidden_size, out_size):
    params = {"linears": [], "bn": []}
    if num_layers == 1:
        dims = [(in_size, out_size)]
    else:
        dims = [(in_size, hidden_size)]
        dims += [(hidden_size, hidden_size)] * (num_layers - 2)
        dims += [(hidden_size, out_size)]

    for (fan_in, fan_out) in dims:
        key, kw, kb = jax.random.split(key, 3)
        bound = 1.0 / jnp.sqrt(fan_in)
        w = jax.random.uniform(kw, (fan_in, fan_out), jnp.float32, -bound, bound)
        b = jax.random.uniform(kb, (fan_out,), jnp.float32, -bound, bound)
        params["linears"].append((w, b))

    for _ in range(num_layers - 1 if num_layers > 1 else 0):
        params["bn"].append((jnp.ones((hidden_size,), jnp.float32),
                             jnp.zeros((hidden_size,), jnp.float32)))
    return params


# ----------------------------------------------------------------------------
# Pure-JAX reference
# ----------------------------------------------------------------------------
def _reference_forward(params, x):
    num_layers = len(params["linears"])
    if num_layers == 1:
        w, b = params["linears"][0]
        return x @ w + b
    h = x
    for layer in range(num_layers - 1):
        w, b = params["linears"][layer]
        gamma, beta = params["bn"][layer]
        z = h @ w + b
        mean = jnp.mean(z, axis=0, keepdims=True)
        var = jnp.mean((z - mean) ** 2, axis=0, keepdims=True)
        h = jnp.maximum(gamma * (z - mean) / jnp.sqrt(var + BN_EPS) + beta, 0.0)
    w, b = params["linears"][-1]
    return h @ w + b


# ----------------------------------------------------------------------------
if __name__ == "__main__":
    key = jax.random.PRNGKey(0)

    def _check(num_layers, in_size, hidden_size, out_size, batch, seed):
        k = jax.random.PRNGKey(seed)
        k, kx = jax.random.split(k)
        x = jax.random.normal(kx, (batch, in_size), jnp.float32)
        params = init_mlp_params(k, num_layers, in_size, hidden_size, out_size)
        out = jax.block_until_ready(mlp_forward(params, x))
        ref = _reference_forward(params, x)
        assert out.shape == (batch, out_size), (out.shape, (batch, out_size))
        assert jnp.allclose(out, ref, atol=2e-4, rtol=2e-4), (
            f"mismatch vs reference (layers={num_layers}, batch={batch})")

    # Main small example: 3-layer MLP (Linear -> BN -> ReLU) x2 -> Linear.
    _check(num_layers=3, in_size=16, hidden_size=32, out_size=8, batch=8, seed=0)

    # num_layers == 1 (pure Linear) path.
    _check(num_layers=1, in_size=16, hidden_size=32, out_size=8, batch=8, seed=1)

    # num_layers == 2 (no middle-layer kernel) path.
    _check(num_layers=2, in_size=16, hidden_size=32, out_size=8, batch=8, seed=2)

    # Larger batch: exercises multi-tile grid, cross-tile BN stat reduction,
    # and masking of zero-padded rows.
    _check(num_layers=3, in_size=20, hidden_size=64, out_size=10, batch=600, seed=3)

    print("KERNEL_OK")
</pallas_src>

<mosaic_0001>
module attributes {stable_mosaic.version = 11 : i64} {
  func.func @_linear_stats_kernel(%arg0: i32, %arg1: memref<8x128xf32, #tpu.memory_space<vmem>>, %arg2: memref<128x128xf32, #tpu.memory_space<vmem>>, %arg3: memref<1x128xf32, #tpu.memory_space<vmem>>, %arg4: memref<8x128xf32, #tpu.memory_space<vmem>>, %arg5: memref<1x2x128xf32, #tpu.memory_space<vmem>>) attributes {dimension_semantics = [#tpu.dimension_semantics<parallel>], iteration_bounds = array<i64: 1>, scalar_prefetch = 0 : i64, scratch_operands = 0 : i64, tpu.core_type = #tpu.core_type<tc>, window_params = [{transform_indices = @transform_0, window_bounds = array<i64: 8, 128>}, {pipeline_mode = #tpu.pipeline_mode<synchronous>, transform_indices = @transform_1, window_bounds = array<i64: 128, 128>}, {pipeline_mode = #tpu.pipeline_mode<synchronous>, transform_indices = @transform_2, window_bounds = array<i64: 1, 128>}, {transform_indices = @transform_3, window_bounds = array<i64: 8, 128>}, {transform_indices = @transform_4, window_bounds = array<i64: 1, 2, 128>}]} {
    %c0 = arith.constant 0 : index
    %c0_0 = arith.constant 0 : index
    %0 = vector.load %arg1[%c0, %c0_0] : memref<8x128xf32, #tpu.memory_space<vmem>>, vector<8x128xf32>
    %c0_1 = arith.constant 0 : index
    %c0_2 = arith.constant 0 : index
    %1 = vector.load %arg2[%c0_1, %c0_2] : memref<128x128xf32, #tpu.memory_space<vmem>>, vector<128x128xf32>
    %cst = arith.constant dense<0.000000e+00> : vector<8x128xf32>
    %2 = tpu.matmul %0, %1, %cst {dimension_numbers = #tpu.dot_dimension_numbers<[1], [0], [0], [1], [0, 0, 1, 1], [], []>} : vector<8x128xf32>, vector<128x128xf32>, vector<8x128xf32> -> vector<8x128xf32>
    %c0_3 = arith.constant 0 : index
    %c0_4 = arith.constant 0 : index
    %3 = vector.load %arg3[%c0_3, %c0_4] : memref<1x128xf32, #tpu.memory_space<vmem>>, vector<1x128xf32>
    %4 = vector.broadcast %3 : vector<1x128xf32> to vector<8x128xf32>
    %5 = arith.addf %2, %4 : vector<8x128xf32>
    %c0_5 = arith.constant 0 : index
    %c0_6 = arith.constant 0 : index
    %6 = vector.load %arg4[%c0_5, %c0_6] : memref<8x128xf32, #tpu.memory_space<vmem>>, vector<8x128xf32>
    tpu.vector_store %arg4[%c0_5, %c0_6], %5 {strides = array<i32>} : memref<8x128xf32, #tpu.memory_space<vmem>>, vector<8x128xf32>,
    %cst_7 = arith.constant dense<0.000000e+00> : vector<128xf32>
    %7 = vector.multi_reduction <add>, %5, %cst_7 [0] : vector<8x128xf32> to vector<128xf32>
    %8 = vector.shape_cast %7 : vector<128xf32> to vector<1x128xf32>
    %9 = arith.mulf %5, %5 : vector<8x128xf32>
    %cst_8 = arith.constant dense<0.000000e+00> : vector<128xf32>
    %10 = vector.multi_reduction <add>, %9, %cst_8 [0] : vector<8x128xf32> to vector<128xf32>
    %11 = vector.shape_cast %10 : vector<128xf32> to vector<1x128xf32>
    %12 = vector.shape_cast %8 : vector<1x128xf32> to vector<1x1x128xf32>
    %c0_9 = arith.constant 0 : index
    %c0_10 = arith.constant 0 : index
    %c0_11 = arith.constant 0 : index
    %13 = vector.load %arg5[%c0_9, %c0_10, %c0_11] : memref<1x2x128xf32, #tpu.memory_space<vmem>>, vector<1x1x128xf32>
    tpu.vector_store %arg5[%c0_9, %c0_10, %c0_11], %12 {strides = array<i32>} : memref<1x2x128xf32, #tpu.memory_space<vmem>>, vector<1x1x128xf32>,
    %14 = vector.shape_cast %11 : vector<1x128xf32> to vector<1x1x128xf32>
    %c0_12 = arith.constant 0 : index
    %c1 = arith.constant 1 : index
    %c0_13 = arith.constant 0 : index
    %15 = vector.load %arg5[%c0_12, %c1, %c0_13] : memref<1x2x128xf32, #tpu.memory_space<vmem>>, vector<1x1x128xf32>
    tpu.vector_store %arg5[%c0_12, %c1, %c0_13], %14 {strides = array<i32>} : memref<1x2x128xf32, #tpu.memory_space<vmem>>, vector<1x1x128xf32>,
    return
  }
  func.func @transform_0(%arg0: i32) -> (i32, i32) {
    %c0_i32 = arith.constant 0 : i32
    %c0_i32_0 = arith.constant 0 : i32
    return %arg0, %c0_i32 : i32, i32
  }
  func.func @transform_1(%arg0: i32) -> (i32, i32) {
    %c0_i32 = arith.constant 0 : i32
    %c0_i32_0 = arith.constant 0 : i32
    %c0_i32_1 = arith.constant 0 : i32
    return %c0_i32, %c0_i32_0 : i32, i32
  }
  func.func @transform_2(%arg0: i32) -> (i32, i32) {
    %c0_i32 = arith.constant 0 : i32
    %c0_i32_0 = arith.constant 0 : i32
    %c0_i32_1 = arith.constant 0 : i32
    return %c0_i32, %c0_i32_0 : i32, i32
  }
  func.func @transform_3(%arg0: i32) -> (i32, i32) {
    %c0_i32 = arith.constant 0 : i32
    %c0_i32_0 = arith.constant 0 : i32
    return %arg0, %c0_i32 : i32, i32
  }
  func.func @transform_4(%arg0: i32) -> (i32, i32, i32) {
    %c0_i32 = arith.constant 0 : i32
    %c0_i32_0 = arith.constant 0 : i32
    %c0_i32_1 = arith.constant 0 : i32
    return %arg0, %c0_i32, %c0_i32_0 : i32, i32, i32
  }
}

module attributes {stable_mosaic.version = 11 : i64} {
  func.func @_bn_relu_linear_stats_kernel(%arg0: i32, %arg1: memref<8x128xf32, #tpu.memory_space<vmem>>, %arg2: memref<1x128xf32, #tpu.memory_space<vmem>>, %arg3: memref<1x128xf32, #tpu.memory_space<vmem>>, %arg4: memref<128x128xf32, #tpu.memory_space<vmem>>, %arg5: memref<1x128xf32, #tpu.memory_space<vmem>>, %arg6: memref<8x128xf32, #tpu.memory_space<vmem>>, %arg7: memref<1x2x128xf32, #tpu.memory_space<vmem>>) attributes {dimension_semantics = [#tpu.dimension_semantics<parallel>], iteration_bounds = array<i64: 1>, scalar_prefetch = 0 : i64, scratch_operands = 0 : i64, tpu.core_type = #tpu.core_type<tc>, window_params = [{transform_indices = @transform_0, window_bounds = array<i64: 8, 128>}, {pipeline_mode = #tpu.pipeline_mode<synchronous>, transform_indices = @transform_1, window_bounds = array<i64: 1, 128>}, {pipeline_mode = #tpu.pipeline_mode<synchronous>, transform_indices = @transform_2, window_bounds = array<i64: 1, 128>}, {pipeline_mode = #tpu.pipeline_mode<synchronous>, transform_indices = @transform_3, window_bounds = array<i64: 128, 128>}, {pipeline_mode = #tpu.pipeline_mode<synchronous>, transform_indices = @transform_4, window_bounds = array<i64: 1, 128>}, {transform_indices = @transform_5, window_bounds = array<i64: 8, 128>}, {transform_indices = @transform_6, window_bounds = array<i64: 1, 2, 128>}]} {
    %c0 = arith.constant 0 : index
    %c0_0 = arith.constant 0 : index
    %0 = vector.load %arg1[%c0, %c0_0] : memref<8x128xf32, #tpu.memory_space<vmem>>, vector<8x128xf32>
    %c0_1 = arith.constant 0 : index
    %c0_2 = arith.constant 0 : index
    %1 = vector.load %arg2[%c0_1, %c0_2] : memref<1x128xf32, #tpu.memory_space<vmem>>, vector<1x128xf32>
    %2 = vector.broadcast %1 : vector<1x128xf32> to vector<8x128xf32>
    %3 = arith.mulf %0, %2 : vector<8x128xf32>
    %c0_3 = arith.constant 0 : index
    %c0_4 = arith.constant 0 : index
    %4 = vector.load %arg3[%c0_3, %c0_4] : memref<1x128xf32, #tpu.memory_space<vmem>>, vector<1x128xf32>
    %5 = vector.broadcast %4 : vector<1x128xf32> to vector<8x128xf32>
    %6 = arith.addf %3, %5 : vector<8x128xf32>
    %cst = arith.constant 0.000000e+00 : f32
    %7 = vector.broadcast %cst : f32 to vector<8x128xf32>
    %8 = arith.maximumf %6, %7 : vector<8x128xf32>
    %c0_5 = arith.constant 0 : index
    %c0_6 = arith.constant 0 : index
    %9 = vector.load %arg4[%c0_5, %c0_6] : memref<128x128xf32, #tpu.memory_space<vmem>>, vector<128x128xf32>
    %cst_7 = arith.constant dense<0.000000e+00> : vector<8x128xf32>
    %10 = tpu.matmul %8, %9, %cst_7 {dimension_numbers = #tpu.dot_dimension_numbers<[1], [0], [0], [1], [0, 0, 1, 1], [], []>} : vector<8x128xf32>, vector<128x128xf32>, vector<8x128xf32> -> vector<8x128xf32>
    %c0_8 = arith.constant 0 : index
    %c0_9 = arith.constant 0 : index
    %11 = vector.load %arg5[%c0_8, %c0_9] : memref<1x128xf32, #tpu.memory_space<vmem>>, vector<1x128xf32>
    %12 = vector.broadcast %11 : vector<1x128xf32> to vector<8x128xf32>
    %13 = arith.addf %10, %12 : vector<8x128xf32>
    %c0_10 = arith.constant 0 : index
    %c0_11 = arith.constant 0 : index
    %14 = vector.load %arg6[%c0_10, %c0_11] : memref<8x128xf32, #tpu.memory_space<vmem>>, vector<8x128xf32>
    tpu.vector_store %arg6[%c0_10, %c0_11], %13 {strides = array<i32>} : memref<8x128xf32, #tpu.memory_space<vmem>>, vector<8x128xf32>,
    %cst_12 = arith.constant dense<0.000000e+00> : vector<128xf32>
    %15 = vector.multi_reduction <add>, %13, %cst_12 [0] : vector<8x128xf32> to vector<128xf32>
    %16 = vector.shape_cast %15 : vector<128xf32> to vector<1x128xf32>
    %17 = arith.mulf %13, %13 : vector<8x128xf32>
    %cst_13 = arith.constant dense<0.000000e+00> : vector<128xf32>
    %18 = vector.multi_reduction <add>, %17, %cst_13 [0] : vector<8x128xf32> to vector<128xf32>
    %19 = vector.shape_cast %18 : vector<128xf32> to vector<1x128xf32>
    %20 = vector.shape_cast %16 : vector<1x128xf32> to vector<1x1x128xf32>
    %c0_14 = arith.constant 0 : index
    %c0_15 = arith.constant 0 : index
    %c0_16 = arith.constant 0 : index
    %21 = vector.load %arg7[%c0_14, %c0_15, %c0_16] : memref<1x2x128xf32, #tpu.memory_space<vmem>>, vector<1x1x128xf32>
    tpu.vector_store %arg7[%c0_14, %c0_15, %c0_16], %20 {strides = array<i32>} : memref<1x2x128xf32, #tpu.memory_space<vmem>>, vector<1x1x128xf32>,
    %22 = vector.shape_cast %19 : vector<1x128xf32> to vector<1x1x128xf32>
    %c0_17 = arith.constant 0 : index
    %c1 = arith.constant 1 : index
    %c0_18 = arith.constant 0 : index
    %23 = vector.load %arg7[%c0_17, %c1, %c0_18] : memref<1x2x128xf32, #tpu.memory_space<vmem>>, vector<1x1x128xf32>
    tpu.vector_store %arg7[%c0_17, %c1, %c0_18], %22 {strides = array<i32>} : memref<1x2x128xf32, #tpu.memory_space<vmem>>, vector<1x1x128xf32>,
    return
  }
  func.func @transform_0(%arg0: i32) -> (i32, i32) {
    %c0_i32 = arith.constant 0 : i32
    %c0_i32_0 = arith.constant 0 : i32
    return %arg0, %c0_i32 : i32, i32
  }
  func.func @transform_1(%arg0: i32) -> (i32, i32) {
    %c0_i32 = arith.constant 0 : i32
    %c0_i32_0 = arith.constant 0 : i32
    %c0_i32_1 = arith.constant 0 : i32
    return %c0_i32, %c0_i32_0 : i32, i32
  }
  func.func @transform_2(%arg0: i32) -> (i32, i32) {
    %c0_i32 = arith.constant 0 : i32
    %c0_i32_0 = arith.constant 0 : i32
    %c0_i32_1 = arith.constant 0 : i32
    return %c0_i32, %c0_i32_0 : i32, i32
  }
  func.func @transform_3(%arg0: i32) -> (i32, i32) {
    %c0_i32 = arith.constant 0 : i32
    %c0_i32_0 = arith.constant 0 : i32
    %c0_i32_1 = arith.constant 0 : i32
    return %c0_i32, %c0_i32_0 : i32, i32
  }
  func.func @transform_4(%arg0: i32) -> (i32, i32) {
    %c0_i32 = arith.constant 0 : i32
    %c0_i32_0 = arith.constant 0 : i32
    %c0_i32_1 = arith.constant 0 : i32
    return %c0_i32, %c0_i32_0 : i32, i32
  }
  func.func @transform_5(%arg0: i32) -> (i32, i32) {
    %c0_i32 = arith.constant 0 : i32
    %c0_i32_0 = arith.constant 0 : i32
    return %arg0, %c0_i32 : i32, i32
  }
  func.func @transform_6(%arg0: i32) -> (i32, i32, i32) {
    %c0_i32 = arith.constant 0 : i32
    %c0_i32_0 = arith.constant 0 : i32
    %c0_i32_1 = arith.constant 0 : i32
    return %arg0, %c0_i32, %c0_i32_0 : i32, i32, i32
  }
}

module attributes {stable_mosaic.version = 11 : i64} {
  func.func @_bn_relu_linear_kernel(%arg0: i32, %arg1: memref<8x128xf32, #tpu.memory_space<vmem>>, %arg2: memref<1x128xf32, #tpu.memory_space<vmem>>, %arg3: memref<1x128xf32, #tpu.memory_space<vmem>>, %arg4: memref<128x128xf32, #tpu.memory_space<vmem>>, %arg5: memref<1x128xf32, #tpu.memory_space<vmem>>, %arg6: memref<8x128xf32, #tpu.memory_space<vmem>>) attributes {dimension_semantics = [#tpu.dimension_semantics<parallel>], iteration_bounds = array<i64: 1>, scalar_prefetch = 0 : i64, scratch_operands = 0 : i64, tpu.core_type = #tpu.core_type<tc>, window_params = [{transform_indices = @transform_0, window_bounds = array<i64: 8, 128>}, {pipeline_mode = #tpu.pipeline_mode<synchronous>, transform_indices = @transform_1, window_bounds = array<i64: 1, 128>}, {pipeline_mode = #tpu.pipeline_mode<synchronous>, transform_indices = @transform_2, window_bounds = array<i64: 1, 128>}, {pipeline_mode = #tpu.pipeline_mode<synchronous>, transform_indices = @transform_3, window_bounds = array<i64: 128, 128>}, {pipeline_mode = #tpu.pipeline_mode<synchronous>, transform_indices = @transform_4, window_bounds = array<i64: 1, 128>}, {transform_indices = @transform_5, window_bounds = array<i64: 8, 128>}]} {
    %c0 = arith.constant 0 : index
    %c0_0 = arith.constant 0 : index
    %0 = vector.load %arg1[%c0, %c0_0] : memref<8x128xf32, #tpu.memory_space<vmem>>, vector<8x128xf32>
    %c0_1 = arith.constant 0 : index
    %c0_2 = arith.constant 0 : index
    %1 = vector.load %arg2[%c0_1, %c0_2] : memref<1x128xf32, #tpu.memory_space<vmem>>, vector<1x128xf32>
    %2 = vector.broadcast %1 : vector<1x128xf32> to vector<8x128xf32>
    %3 = arith.mulf %0, %2 : vector<8x128xf32>
    %c0_3 = arith.constant 0 : index
    %c0_4 = arith.constant 0 : index
    %4 = vector.load %arg3[%c0_3, %c0_4] : memref<1x128xf32, #tpu.memory_space<vmem>>, vector<1x128xf32>
    %5 = vector.broadcast %4 : vector<1x128xf32> to vector<8x128xf32>
    %6 = arith.addf %3, %5 : vector<8x128xf32>
    %cst = arith.constant 0.000000e+00 : f32
    %7 = vector.broadcast %cst : f32 to vector<8x128xf32>
    %8 = arith.maximumf %6, %7 : vector<8x128xf32>
    %c0_5 = arith.constant 0 : index
    %c0_6 = arith.constant 0 : index
    %9 = vector.load %arg4[%c0_5, %c0_6] : memref<128x128xf32, #tpu.memory_space<vmem>>, vector<128x128xf32>
    %cst_7 = arith.constant dense<0.000000e+00> : vector<8x128xf32>
    %10 = tpu.matmul %8, %9, %cst_7 {dimension_numbers = #tpu.dot_dimension_numbers<[1], [0], [0], [1], [0, 0, 1, 1], [], []>} : vector<8x128xf32>, vector<128x128xf32>, vector<8x128xf32> -> vector<8x128xf32>
    %c0_8 = arith.constant 0 : index
    %c0_9 = arith.constant 0 : index
    %11 = vector.load %arg5[%c0_8, %c0_9] : memref<1x128xf32, #tpu.memory_space<vmem>>, vector<1x128xf32>
    %12 = vector.broadcast %11 : vector<1x128xf32> to vector<8x128xf32>
    %13 = arith.addf %10, %12 : vector<8x128xf32>
    %c0_10 = arith.constant 0 : index
    %c0_11 = arith.constant 0 : index
    %14 = vector.load %arg6[%c0_10, %c0_11] : memref<8x128xf32, #tpu.memory_space<vmem>>, vector<8x128xf32>
    tpu.vector_store %arg6[%c0_10, %c0_11], %13 {strides = array<i32>} : memref<8x128xf32, #tpu.memory_space<vmem>>, vector<8x128xf32>,
    return
  }
  func.func @transform_0(%arg0: i32) -> (i32, i32) {
    %c0_i32 = arith.constant 0 : i32
    %c0_i32_0 = arith.constant 0 : i32
    return %arg0, %c0_i32 : i32, i32
  }
  func.func @transform_1(%arg0: i32) -> (i32, i32) {
    %c0_i32 = arith.constant 0 : i32
    %c0_i32_0 = arith.constant 0 : i32
    %c0_i32_1 = arith.constant 0 : i32
    return %c0_i32, %c0_i32_0 : i32, i32
  }
  func.func @transform_2(%arg0: i32) -> (i32, i32) {
    %c0_i32 = arith.constant 0 : i32
    %c0_i32_0 = arith.constant 0 : i32
    %c0_i32_1 = arith.constant 0 : i32
    return %c0_i32, %c0_i32_0 : i32, i32
  }
  func.func @transform_3(%arg0: i32) -> (i32, i32) {
    %c0_i32 = arith.constant 0 : i32
    %c0_i32_0 = arith.constant 0 : i32
    %c0_i32_1 = arith.constant 0 : i32
    return %c0_i32, %c0_i32_0 : i32, i32
  }
  func.func @transform_4(%arg0: i32) -> (i32, i32) {
    %c0_i32 = arith.constant 0 : i32
    %c0_i32_0 = arith.constant 0 : i32
    %c0_i32_1 = arith.constant 0 : i32
    return %c0_i32, %c0_i32_0 : i32, i32
  }
  func.func @transform_5(%arg0: i32) -> (i32, i32) {
    %c0_i32 = arith.constant 0 : i32
    %c0_i32_0 = arith.constant 0 : i32
    return %arg0, %c0_i32 : i32, i32
  }
}

</mosaic_0001>

<bundles_post_ra>
// kernel: mlp_forward.5
= control target key start
LH: loop header
LB: loop body
LE: loop exit
PB: predicated region body
PF: predicated region fallthrough
CT: control target
= control target key end

     0   :  { %v254_v3 = vmov 0.0|0.0   ;;  %vm255_vm0 = vmmov 0   ;;  %v256_v6 = vmov 0.0   ;;  %s360_s0 = inlined_call_operand.vmem [shape: f32[8,128], index: 0, kind: input, shape index: {}]   ;;  %s361_s1 = inlined_call_operand.vmem [shape: f32[1,128], index: 1, kind: input, shape index: {}]   ;;  %s362_s2 = inlined_call_operand.vmem [shape: f32[1,128], index: 2, kind: input, shape index: {}]   ;;  %s363_s3 = inlined_call_operand.vmem [shape: f32[128,128], index: 3, kind: input, shape index: {}]   ;;  %s364_s4 = inlined_call_operand.vmem [shape: f32[1,128], index: 4, kind: input, shape index: {}]   ;;  %s365_s5 = inlined_call_operand.hbm [shape: f32[8,128], index: 5, kind: output, shape index: {}]  }
   0x1   :  { %v39_v0 = vld [vmem:[%s363_s3] sm:$0xff]  ;;  %v40_v1 = vld [vmem:[%s363_s3 + $0x8] sm:$0xff]  ;;  %v41_v2 = vld [vmem:[%s363_s3 + $0x10] sm:$0xff]  ;;  %202 = vmatprep.subr.bf16.mxu0 %v254_v3  ;;  %199 = vmatprep.mubr.msk.f32.mxu0 %vm255_vm0, %v256_v6 }
   0x2   :  { %v203_v4 = vpack.c.bf16 %v40_v1, %v39_v0  ;;  %v42_v5 = vld [vmem:[%s363_s3 + $0x18] sm:$0xff]  ;;  %v43_v8 = vld [vmem:[%s363_s3 + $0x20] sm:$0xff]  ;;  %v44_v9 = vld [vmem:[%s363_s3 + $0x28] sm:$0xff] }
   0x3   :  { %v206_v7 = vpack.c.bf16 %v42_v5, %v41_v2 }
   0x4   :  { %204 = vmatpush3.bf16.msra.mxu0 %v203_v4 }
   0x5   :  { %205 = vmatprep.subr.bf16.mxu0 %v254_v3 }
   0x6   :  { %10 = vsyncpa [#allocation3], 0  ;;  %v209_v10 = vpack.c.bf16 %v44_v9, %v43_v8  ;;  %v45_v11 = vld [vmem:[%s363_s3 + $0x30] sm:$0xff]  ;;  %v46_v12 = vld [vmem:[%s363_s3 + $0x38] sm:$0xff] }
   0x7   :  { %v212_v13 = vpack.c.bf16 %v46_v12, %v45_v11  ;;  %v47_v14 = vld [vmem:[%s363_s3 + $0x40] sm:$0xff]  ;;  %v48_v15 = vld [vmem:[%s363_s3 + $0x48] sm:$0xff]  ;;  %v49_v17 = vld [vmem:[%s363_s3 + $0x50] sm:$0xff] }
   0x8   :  { %207 = vmatpush3.bf16.msra.mxu0 %v206_v7  ;;  %v215_v16 = vpack.c.bf16 %v48_v15, %v47_v14  ;;  %v50_v18 = vld [vmem:[%s363_s3 + $0x58] sm:$0xff]  ;;  %v21_v20 = vld [vmem:[%s360_s0] sm:$0xff]  ;;  %v52_v23 = vld [vmem:[%s363_s3 + $0x68] sm:$0xff] }
   0x9   :  { %208 = vmatprep.subr.bf16.mxu0 %v254_v3  ;;  %v218_v19 = vpack.c.bf16 %v50_v18, %v49_v17  ;;  %v147_v21 = vld [vmem:[%s361_s1] ss:$0 sm:$0xff]  ;;  %v53_v27 = vld [vmem:[%s363_s3 + $0x70] sm:$0xff]  ;;  %v54_v28 = vld [vmem:[%s363_s3 + $0x78] sm:$0xff] }
   0xa   :  { %v51_v22 = vld [vmem:[%s363_s3 + $0x60] sm:$0xff]  ;;  %v29_v24 = vmul.f32 %v147_v21, %v21_v20  ;;  %v224_v30 = vpack.c.bf16 %v54_v28, %v53_v27 }
   0xb   :  { %v221_v25 = vpack.c.bf16 %v52_v23, %v51_v22  ;;  %v148_v26 = vld [vmem:[%s362_s2] ss:$0 sm:$0xff]  ;;  %s257_s2 = smov [#allocation2]  }
   0xc   :  { %210 = vmatpush3.bf16.msra.mxu0 %v209_v10  ;;  %v37_v29 = vadd.f32 %v148_v26, %v29_v24  ;;  %v149_v32 = vld [vmem:[%s364_s4] ss:$0 sm:$0xff]  ;;  %s139_s6 = sshll.u32 %s257_s2, 4  ;;  %s140_s6 = int_to_ptr.vmem [resolvable:$true] %s139_s6 }
   0xd   :  { %211 = vmatprep.subr.bf16.mxu0 %v254_v3  ;;  %s230_s7 = scalar_lea.vmem %s140_s6, 128  ;;  %p235_p1 = scmp.lt.s32.totalorder %s140_s6, %s140_s6 }
   0xe   :  { %v38_v31 = vmax.f32 %v37_v29, 0.0  ;;  %p231_p0 = scmp.ne.s32.totalorder %s140_s6, %s230_s7  ;;  %p236_p2 = scmp.lt.s32.totalorder %s230_s7, %s230_s7 }
  0x10   :  { %213 = vmatpush3.bf16.msra.mxu0 %v212_v13  ;;  %p237_p3 = por %p236_p2, %p235_p1 }
  0x11   :  { %214 = vmatprep.subr.bf16.mxu0 %v254_v3 }
  0x12   :  { %p238_p4 = pnand %p237_p3, %p231_p0 }
  0x14   :  { %216 = vmatpush3.bf16.msra.mxu0 %v215_v16 }
  0x15   :  { %217 = vmatprep.subr.bf16.mxu0 %v254_v3 }
  0x18   :  { %219 = vmatpush3.bf16.msra.mxu0 %v218_v19 }
  0x19   :  { %220 = vmatprep.subr.bf16.mxu0 %v254_v3 }
  0x1c   :  { %222 = vmatpush3.bf16.msra.mxu0 %v221_v25 }
  0x1d   :  { %223 = vmatprep.subr.bf16.mxu0 %v254_v3 }
  0x20   :  { %225 = vmatpush3.bf16.msra.mxu0 %v224_v30 }
  0x23   :  { %200 = vmatmul.mubr.f32.vlgmr.msra.gmra.mrb[0].mxu0 %v38_v31 }
  0xf6   :  { %v128_v33 = vpop.f32.mrb[0].mxu0 }
  0xf7   :  { %v129_v34 = vadd.f32 %v149_v32, %v128_v33  ;;  %v201_v35 = vpop.f32.mrb[1].mxu0 }
  0xf9   :  { %132 = vst [vmem:[#allocation2] sm:$0xff] %v129_v34 }
  0xfa   :  { %241 = shalt.err (!%p238_p4)
}
  0xfb   :  { %s242_s9 = scalar_lea.hbm %s365_s5, 128 }
  0xfc   :  { %p243_p5 = scmp.ne.s32.totalorder %s365_s5, %s242_s9  ;;  %p246_p6 = scmp.lt.u32.totalorder %s242_s9, %s365_s5 }
  0xfe   :  { %p248_p7 = pnand %p246_p6, %p243_p5 }
 0x100   :  { %251 = shalt.err (!%p248_p7)
}
 0x101   :  { %142 = dma.vmem_to_hbm [thread:$0]  %s140_s6, 128, %s365_s5, [#allocation3]  }
 0x102   :  { %252 = dma.done.wait [#allocation3], 128  }
 0x103   :  { %253 = vsyncadd [#allocation3], 4294967168 }
 0x104   :  { %146 = vsyncpa [#allocation3], 1 }

// kernel: mlp_forward.3
= control target key start
LH: loop header
LB: loop body
LE: loop exit
PB: predicated region body
PF: predicated region fallthrough
CT: control target
= control target key end

     0   :  { %v214_v0 = vmov 0.0|0.0   ;;  %vm215_vm0 = vmmov 0   ;;  %v216_v4 = vmov 0.0   ;;  %s305_s1 = inlined_call_operand.vmem [shape: f32[128,128], index: 1, kind: input, shape index: {}]   ;;  %s306_s0 = inlined_call_operand.vmem [shape: f32[8,128], index: 0, kind: input, shape index: {}]   ;;  %s307_s2 = inlined_call_operand.vmem [shape: f32[1,128], index: 2, kind: input, shape index: {}]   ;;  %s308_s3 = inlined_call_operand.vmem [shape: f32[8,128], index: 3, kind: output, shape index: {0}]   ;;  %s309_s4 = inlined_call_operand.vmem [shape: f32[1,2,128], index: 4, kind: output, shape index: {1}]  }
   0x1   :  { %187 = vmatprep.subr.bf16.mxu0 %v214_v0  ;;  %v17_v1 = vld [vmem:[%s305_s1] sm:$0xff]  ;;  %v18_v2 = vld [vmem:[%s305_s1 + $0x8] sm:$0xff]  ;;  %v19_v3 = vld [vmem:[%s305_s1 + $0x10] sm:$0xff]  ;;  %184 = vmatprep.mubr.msk.f32.mxu0 %vm215_vm0, %v216_v4 }
   0x2   :  { %v188_v5 = vpack.c.bf16 %v18_v2, %v17_v1  ;;  %v20_v6 = vld [vmem:[%s305_s1 + $0x18] sm:$0xff]  ;;  %v21_v8 = vld [vmem:[%s305_s1 + $0x20] sm:$0xff]  ;;  %v22_v9 = vld [vmem:[%s305_s1 + $0x28] sm:$0xff] }
   0x3   :  { %v191_v7 = vpack.c.bf16 %v20_v6, %v19_v3  ;;  %v194_v10 = vpack.c.bf16 %v22_v9, %v21_v8  ;;  %v23_v11 = vld [vmem:[%s305_s1 + $0x30] sm:$0xff]  ;;  %v24_v12 = vld [vmem:[%s305_s1 + $0x38] sm:$0xff]  ;;  %v25_v14 = vld [vmem:[%s305_s1 + $0x40] sm:$0xff] }
   0x4   :  { %189 = vmatpush3.bf16.msra.mxu0 %v188_v5  ;;  %v197_v13 = vpack.c.bf16 %v24_v12, %v23_v11  ;;  %v26_v15 = vld [vmem:[%s305_s1 + $0x48] sm:$0xff]  ;;  %v27_v17 = vld [vmem:[%s305_s1 + $0x50] sm:$0xff]  ;;  %v28_v18 = vld [vmem:[%s305_s1 + $0x58] sm:$0xff] }
   0x5   :  { %190 = vmatprep.subr.bf16.mxu0 %v214_v0  ;;  %v200_v16 = vpack.c.bf16 %v26_v15, %v25_v14  ;;  %v203_v19 = vpack.c.bf16 %v28_v18, %v27_v17  ;;  %v29_v20 = vld [vmem:[%s305_s1 + $0x60] sm:$0xff]  ;;  %v30_v21 = vld [vmem:[%s305_s1 + $0x68] sm:$0xff]  ;;  %v31_v23 = vld [vmem:[%s305_s1 + $0x70] sm:$0xff] }
   0x6   :  { %v206_v22 = vpack.c.bf16 %v30_v21, %v29_v20  ;;  %v32_v24 = vld [vmem:[%s305_s1 + $0x78] sm:$0xff]  ;;  %v16_v26 = vld [vmem:[%s306_s0] sm:$0xff] }
   0x7   :  { %v209_v25 = vpack.c.bf16 %v32_v24, %v31_v23  ;;  %v134_v27 = vld [vmem:[%s307_s2] ss:$0 sm:$0xff] }
   0x8   :  { %192 = vmatpush3.bf16.msra.mxu0 %v191_v7 }
   0x9   :  { %193 = vmatprep.subr.bf16.mxu0 %v214_v0 }
   0xc   :  { %195 = vmatpush3.bf16.msra.mxu0 %v194_v10 }
   0xd   :  { %196 = vmatprep.subr.bf16.mxu0 %v214_v0 }
  0x10   :  { %198 = vmatpush3.bf16.msra.mxu0 %v197_v13 }
  0x11   :  { %199 = vmatprep.subr.bf16.mxu0 %v214_v0 }
  0x14   :  { %201 = vmatpush3.bf16.msra.mxu0 %v200_v16 }
  0x15   :  { %202 = vmatprep.subr.bf16.mxu0 %v214_v0 }
  0x18   :  { %204 = vmatpush3.bf16.msra.mxu0 %v203_v19 }
  0x19   :  { %205 = vmatprep.subr.bf16.mxu0 %v214_v0 }
  0x1c   :  { %207 = vmatpush3.bf16.msra.mxu0 %v206_v22 }
  0x1d   :  { %208 = vmatprep.subr.bf16.mxu0 %v214_v0 }
  0x20   :  { %210 = vmatpush3.bf16.msra.mxu0 %v209_v25 }
  0x23   :  { %185 = vmatmul.mubr.f32.vlgmr.msra.gmra.mrb[0].mxu0 %v16_v26 }
  0xf6   :  { %v106_v28 = vpop.f32.mrb[0].mxu0 }
  0xf7   :  { %v107_v29 = vadd.f32 %v134_v27, %v106_v28  ;;  %v186_v30 = vpop.f32.mrb[1].mxu0 }
  0xf9   :  { %110 = vst [vmem:[%s308_s3] sm:$0xff] %v107_v29  ;;  %v111_v31 = vrot.slane %v107_v29, 4  ;;  %v117_v32 = vmul.f32 %v107_v29, %v107_v29 }
  0xfb   :  { %v112_v33 = vadd.f32 %v111_v31, %v107_v29  ;;  %v118_v34 = vrot.slane %v117_v32, 4 }
  0xfd   :  { %v113_v35 = vrot.slane %v112_v33, 2  ;;  %v119_v36 = vadd.f32 %v118_v34, %v117_v32 }
  0xff   :  { %v114_v37 = vadd.f32 %v113_v35, %v112_v33  ;;  %v120_v38 = vrot.slane %v119_v36, 2 }
 0x101   :  { %v115_v39 = vrot.slane %v114_v37, 1  ;;  %v121_v40 = vadd.f32 %v120_v38, %v119_v36 }
 0x103   :  { %v116_v41 = vadd.f32 %v115_v39, %v114_v37  ;;  %v122_v42 = vrot.slane %v121_v40, 1 }
 0x105   :  { %v123_v43 = vadd.f32 %v122_v42, %v121_v40  ;;  %124 = vst [vmem:[%s309_s4] sm:$0x1] %v116_v41 }
 0x107   :  { %125 = vst [vmem:[%s309_s4 + $0x1] sm:$0x1] %v123_v43 }

// kernel: mlp_forward.4
= control target key start
LH: loop header
LB: loop body
LE: loop exit
PB: predicated region body
PF: predicated region fallthrough
CT: control target
= control target key end

     0   :  { %v239_v0 = vmov 0.0|0.0   ;;  %vm240_vm0 = vmmov 0   ;;  %v241_v4 = vmov 0.0   ;;  %s346_s3 = inlined_call_operand.vmem [shape: f32[128,128], index: 3, kind: input, shape index: {}]   ;;  %s347_s0 = inlined_call_operand.vmem [shape: f32[8,128], index: 0, kind: input, shape index: {}]   ;;  %s348_s1 = inlined_call_operand.vmem [shape: f32[1,128], index: 1, kind: input, shape index: {}]   ;;  %s349_s2 = inlined_call_operand.vmem [shape: f32[1,128], index: 2, kind: input, shape index: {}]   ;;  %s350_s4 = inlined_call_operand.vmem [shape: f32[1,128], index: 4, kind: input, shape index: {}]   ;;  %s351_s5 = inlined_call_operand.vmem [shape: f32[8,128], index: 5, kind: output, shape index: {0}]   ;;  %s352_s6 = inlined_call_operand.vmem [shape: f32[1,2,128], index: 6, kind: output, shape index: {1}]  }
   0x1   :  { %212 = vmatprep.subr.bf16.mxu0 %v239_v0  ;;  %v40_v1 = vld [vmem:[%s346_s3] sm:$0xff]  ;;  %v41_v2 = vld [vmem:[%s346_s3 + $0x8] sm:$0xff]  ;;  %v42_v3 = vld [vmem:[%s346_s3 + $0x10] sm:$0xff]  ;;  %209 = vmatprep.mubr.msk.f32.mxu0 %vm240_vm0, %v241_v4 }
   0x2   :  { %v213_v5 = vpack.c.bf16 %v41_v2, %v40_v1  ;;  %v43_v6 = vld [vmem:[%s346_s3 + $0x18] sm:$0xff]  ;;  %v44_v8 = vld [vmem:[%s346_s3 + $0x20] sm:$0xff]  ;;  %v45_v9 = vld [vmem:[%s346_s3 + $0x28] sm:$0xff] }
   0x3   :  { %v216_v7 = vpack.c.bf16 %v43_v6, %v42_v3  ;;  %v219_v10 = vpack.c.bf16 %v45_v9, %v44_v8  ;;  %v46_v11 = vld [vmem:[%s346_s3 + $0x30] sm:$0xff]  ;;  %v47_v12 = vld [vmem:[%s346_s3 + $0x38] sm:$0xff]  ;;  %v48_v14 = vld [vmem:[%s346_s3 + $0x40] sm:$0xff] }
   0x4   :  { %214 = vmatpush3.bf16.msra.mxu0 %v213_v5  ;;  %v222_v13 = vpack.c.bf16 %v47_v12, %v46_v11  ;;  %v49_v15 = vld [vmem:[%s346_s3 + $0x48] sm:$0xff]  ;;  %v50_v17 = vld [vmem:[%s346_s3 + $0x50] sm:$0xff]  ;;  %v51_v18 = vld [vmem:[%s346_s3 + $0x58] sm:$0xff] }
   0x5   :  { %215 = vmatprep.subr.bf16.mxu0 %v239_v0  ;;  %v225_v16 = vpack.c.bf16 %v49_v15, %v48_v14  ;;  %v228_v19 = vpack.c.bf16 %v51_v18, %v50_v17  ;;  %v22_v20 = vld [vmem:[%s347_s0] sm:$0xff]  ;;  %v53_v23 = vld [vmem:[%s346_s3 + $0x68] sm:$0xff]  ;;  %v54_v27 = vld [vmem:[%s346_s3 + $0x70] sm:$0xff] }
   0x6   :  { %v157_v21 = vld [vmem:[%s348_s1] ss:$0 sm:$0xff]  ;;  %v55_v28 = vld [vmem:[%s346_s3 + $0x78] sm:$0xff] }
   0x7   :  { %v52_v22 = vld [vmem:[%s346_s3 + $0x60] sm:$0xff]  ;;  %v30_v24 = vmul.f32 %v157_v21, %v22_v20  ;;  %v234_v30 = vpack.c.bf16 %v55_v28, %v54_v27 }
   0x8   :  { %217 = vmatpush3.bf16.msra.mxu0 %v216_v7  ;;  %v231_v25 = vpack.c.bf16 %v53_v23, %v52_v22  ;;  %v158_v26 = vld [vmem:[%s349_s2] ss:$0 sm:$0xff] }
   0x9   :  { %218 = vmatprep.subr.bf16.mxu0 %v239_v0  ;;  %v38_v29 = vadd.f32 %v158_v26, %v30_v24  ;;  %v159_v32 = vld [vmem:[%s350_s4] ss:$0 sm:$0xff] }
   0xb   :  { %v39_v31 = vmax.f32 %v38_v29, 0.0 }
   0xc   :  { %220 = vmatpush3.bf16.msra.mxu0 %v219_v10 }
   0xd   :  { %221 = vmatprep.subr.bf16.mxu0 %v239_v0 }
  0x10   :  { %223 = vmatpush3.bf16.msra.mxu0 %v222_v13 }
  0x11   :  { %224 = vmatprep.subr.bf16.mxu0 %v239_v0 }
  0x14   :  { %226 = vmatpush3.bf16.msra.mxu0 %v225_v16 }
  0x15   :  { %227 = vmatprep.subr.bf16.mxu0 %v239_v0 }
  0x18   :  { %229 = vmatpush3.bf16.msra.mxu0 %v228_v19 }
  0x19   :  { %230 = vmatprep.subr.bf16.mxu0 %v239_v0 }
  0x1c   :  { %232 = vmatpush3.bf16.msra.mxu0 %v231_v25 }
  0x1d   :  { %233 = vmatprep.subr.bf16.mxu0 %v239_v0 }
  0x20   :  { %235 = vmatpush3.bf16.msra.mxu0 %v234_v30 }
  0x23   :  { %210 = vmatmul.mubr.f32.vlgmr.msra.gmra.mrb[0].mxu0 %v39_v31 }
  0xf6   :  { %v129_v33 = vpop.f32.mrb[0].mxu0 }
  0xf7   :  { %v130_v34 = vadd.f32 %v159_v32, %v129_v33  ;;  %v211_v35 = vpop.f32.mrb[1].mxu0 }
  0xf9   :  { %133 = vst [vmem:[%s351_s5] sm:$0xff] %v130_v34  ;;  %v134_v36 = vrot.slane %v130_v34, 4  ;;  %v140_v37 = vmul.f32 %v130_v34, %v130_v34 }
  0xfb   :  { %v135_v38 = vadd.f32 %v134_v36, %v130_v34  ;;  %v141_v39 = vrot.slane %v140_v37, 4 }
  0xfd   :  { %v136_v40 = vrot.slane %v135_v38, 2  ;;  %v142_v41 = vadd.f32 %v141_v39, %v140_v37 }
  0xff   :  { %v137_v42 = vadd.f32 %v136_v40, %v135_v38  ;;  %v143_v43 = vrot.slane %v142_v41, 2 }
 0x101   :  { %v138_v44 = vrot.slane %v137_v42, 1  ;;  %v144_v45 = vadd.f32 %v143_v43, %v142_v41 }
 0x103   :  { %v139_v46 = vadd.f32 %v138_v44, %v137_v42  ;;  %v145_v47 = vrot.slane %v144_v45, 1 }
 0x105   :  { %v146_v48 = vadd.f32 %v145_v47, %v144_v45  ;;  %147 = vst [vmem:[%s352_s6] sm:$0x1] %v139_v46 }
 0x107   :  { %148 = vst [vmem:[%s352_s6 + $0x1] sm:$0x1] %v146_v48 }

</bundles_post_ra>
